<compile_context>
chip_gen: v7x
topology: tpu7x:2x2x1
jax: 0.10.0
libtpu: 0.0.40
codegen_flags: <defaults>
</compile_context>

<pallas_src>
import functools

import jax
import jax.numpy as jnp
from jax.experimental import pallas as pl
from jax.experimental.pallas import tpu as pltpu

STATE_FEATURES = [
    'base_fico', 'annual_income', 'credit_limit', 'utilization', 'payment_ratio',
    'pd_point', 'lgd_est', 'ead', 'dpd', 'macro_unemp', 'macro_rate',
    'fwd_pd_point', 'fwd_utilization'
]
STATE_DIM = len(STATE_FEATURES)  # 13


def _round_up(x, m):
    return (x + m - 1) // m * m


# --------------------------------------------------------------------------
# Kernel
# --------------------------------------------------------------------------
def _twinq_kernel(x_ref,
                  w1_ref,
                  w2a_ref, b2a_ref, w2b_ref, b2b_ref,
                  w3a_ref, w3b_ref, b3_ref,
                  q_ref):
    """One batch tile; both twin branches fused / interleaved.

    x_ref   : (TB, SD+2)   bf16   [state | action | 1]  (1-col carries b1)
    w1_ref  : (SD+2, 2H)   bf16   [[w1a | w1b] ; [b1a | b1b]]
    w2{a,b} : (H, H)       bf16
    b2{a,b} : (1, H)       bf16
    w3{a,b} : (H, 1)       bf16
    b3_ref  : (1, 2)       f32    [b3a | b3b]
    q_ref   : (TB, 2)      f32    [q1 | q2]
    """
    hidden = w2a_ref.shape[0]

    x = x_ref[...]                                                       # bf16

    # ---- layer 1: both branches fused column-wise; bias folded into the dot
    h1 = jnp.dot(x, w1_ref[...], preferred_element_type=jnp.float32)    # (TB, 2H) f32
    h1 = jnp.maximum(h1.astype(jnp.bfloat16), 0.0)                       # bf16 ReLU
    h1a = h1[:, :hidden]
    h1b = h1[:, hidden:]

    # ---- layer 2: two (H,H) matmuls, interleaved; bf16 bias+ReLU epilogue ----
    h2a = jnp.dot(h1a, w2a_ref[...], preferred_element_type=jnp.float32)
    h2b = jnp.dot(h1b, w2b_ref[...], preferred_element_type=jnp.float32)
    h2a = jnp.maximum(h2a.astype(jnp.bfloat16) + b2a_ref[...], 0.0)
    h2b = jnp.maximum(h2b.astype(jnp.bfloat16) + b2b_ref[...], 0.0)

    # ---- layer 3: two thin (H,1) dots; no hidden-axis concat, no block-diag ----
    q1 = jnp.dot(h2a, w3a_ref[...], preferred_element_type=jnp.float32)  # (TB, 1)
    q2 = jnp.dot(h2b, w3b_ref[...], preferred_element_type=jnp.float32)  # (TB, 1)
    q_ref[...] = jnp.concatenate([q1, q2], axis=-1) + b3_ref[...]


# --------------------------------------------------------------------------
# Parameters
# --------------------------------------------------------------------------
def _linear_init(key, fan_in, fan_out, dtype=jnp.float32):
    """PyTorch nn.Linear default init: U(-1/sqrt(fan_in), 1/sqrt(fan_in)).
    Weight stored (in, out) so forward is x @ W + b."""
    kw, kb = jax.random.split(key)
    bound = 1.0 / jnp.sqrt(jnp.asarray(fan_in, dtype))
    w = jax.random.uniform(kw, (fan_in, fan_out), dtype, -bound, bound)
    b = jax.random.uniform(kb, (1, fan_out), dtype, -bound, bound)
    return w, b


def init_twinq_params(key, state_dim=STATE_DIM, hidden=256):
    in_dim = state_dim + 1
    keys = jax.random.split(key, 6)
    w1a, b1a = _linear_init(keys[0], in_dim, hidden)
    w2a, b2a = _linear_init(keys[1], hidden, hidden)
    w3a, b3a = _linear_init(keys[2], hidden, 1)
    w1b, b1b = _linear_init(keys[3], in_dim, hidden)
    w2b, b2b = _linear_init(keys[4], hidden, hidden)
    w3b, b3b = _linear_init(keys[5], hidden, 1)
    return (w1a, b1a, w2a, b2a, w3a, b3a,
            w1b, b1b, w2b, b2b, w3b, b3b)


def prepare_kernel_params(params):
    """Fuse / re-layout the per-layer f32 params into the kernel's format."""
    (w1a, b1a, w2a, b2a, w3a, b3a,
     w1b, b1b, w2b, b2b, w3b, b3b) = params

    # Layer 1: twin branches fused column-wise; the bias is appended as an
    # extra weight row, activated by the constant-1 column appended to x.
    #   w1 = [[w1a | w1b]      (SD+1, 2H)  -- includes the action row
    #         [b1a | b1b]]     (1, 2H)
    w1 = jnp.concatenate(
        [jnp.concatenate([w1a, w1b], axis=1),
         jnp.concatenate([b1a, b1b], axis=1)], axis=0).astype(jnp.bfloat16)

    # Layer 2: weights and biases in bf16 (bf16 epilogue on the VPU).
    w2a_k = w2a.astype(jnp.bfloat16)
    b2a_k = b2a.astype(jnp.bfloat16)
    w2b_k = w2b.astype(jnp.bfloat16)
    b2b_k = b2b.astype(jnp.bfloat16)

    # Layer 3: two thin (H,1) weights; final bias stays f32 (tiny).
    w3a_k = w3a.astype(jnp.bfloat16)
    w3b_k = w3b.astype(jnp.bfloat16)
    b3 = jnp.concatenate([b3a, b3b], axis=1)            # (1, 2) f32

    return (w1, w2a_k, b2a_k, w2b_k, b2b_k, w3a_k, w3b_k, b3)


# --------------------------------------------------------------------------
# Forward
# --------------------------------------------------------------------------
def twinq_forward(s, a, kernel_params, *, tile_b=1024):
    """s: (B, state_dim) f32, a: (B, 1) f32 -> (q1, q2) each (B, 1) f32."""
    (w1, w2a, b2a, w2b, b2b, w3a, w3b, b3) = kernel_params
    B, sd = s.shape
    in_dim = sd + 2   # state | action | constant-1 (bias) column

    # x = [s | a | 1] in bf16: folds the action term and b1 into the layer-1
    # matmul, so the kernel epilogue is pure ReLU.
    # TODO(synk): keep s in f32 for layer 1 (or normalize upstream) if raw,
    # unnormalized credit features are fed in — bf16 keeps only ~3 sig digits.
    ones = jnp.ones((B, 1), s.dtype)
    x = jnp.concatenate([s, a.astype(s.dtype), ones], axis=-1).astype(jnp.bfloat16)

    # Batch tile: multiple of 16 (bf16 packs (16,128) per vreg); cap so the
    # grid has >=4 steps when possible, letting v7x shard the "parallel" batch
    # axis across both TensorCores. (On v5e/v6e with huge B, tile_b=2048-4096
    # is also fine if vmem_limit_bytes is raised accordingly.)
    tile_b = min(tile_b, _round_up(pl.cdiv(B, 4), 16))
    tile_b = max(16, _round_up(tile_b, 16))
    Bp = _round_up(B, tile_b)
    if Bp != B:
        x = jnp.pad(x, ((0, Bp - B), (0, 0)))   # padded rows produce garbage q, sliced off below

    grid = (Bp // tile_b,)

    def resident(arr):
        # Full-array block with a constant index map: DMA'd once and reused
        # across grid steps (Pallas skips the DMA when the block index repeats).
        # pipeline_mode=pl.Buffered(1) would drop the redundant 2nd buffer; the
        # default is accepted here (~0.5 MB, minor).
        return pl.BlockSpec(arr.shape, lambda i: (0, 0))

    in_specs = [
        pl.BlockSpec((tile_b, in_dim), lambda i: (i, 0)),   # x tile
        resident(w1),
        resident(w2a), resident(b2a), resident(w2b), resident(b2b),
        resident(w3a), resident(w3b), resident(b3),
    ]
    out_specs = pl.BlockSpec((tile_b, 2), lambda i: (i, 0))

    q = pl.pallas_call(
        _twinq_kernel,
        out_shape=jax.ShapeDtypeStruct((Bp, 2), jnp.float32),
        grid_spec=pltpu.PrefetchScalarGridSpec(
            num_scalar_prefetch=0,
            grid=grid,
            in_specs=in_specs,
            out_specs=out_specs,
        ),
        compiler_params=pltpu.CompilerParams(
            # v7x: shard the batch grid across its 2 TensorCores.
            dimension_semantics=("parallel",),
            # Default scoped-VMEM limit is plenty (~8-12 MiB footprint at
            # tile_b=1024); do not claim all of v7x's 64 MiB.
        ),
    )(x, w1, w2a, b2a, w2b, b2b, w3a, w3b, b3)

    q = q[:B]
    return q[:, 0:1], q[:, 1:2]


# --------------------------------------------------------------------------
# Pure-JAX f32 reference
# --------------------------------------------------------------------------
def _reference_forward(s, a, params):
    (w1a, b1a, w2a, b2a, w3a, b3a,
     w1b, b1b, w2b, b2b, w3b, b3b) = params
    x = jnp.concatenate([s, a], axis=-1)

    def branch(w1, b1, w2, b2, w3, b3):
        h = jnp.maximum(x @ w1 + b1, 0.0)
        h = jnp.maximum(h @ w2 + b2, 0.0)
        return h @ w3 + b3

    return (branch(w1a, b1a, w2a, b2a, w3a, b3a),
            branch(w1b, b1b, w2b, b2b, w3b, b3b))


if __name__ == "__main__":
    key = jax.random.PRNGKey(0)
    k_params, k_s, k_a = jax.random.split(key, 3)

    B = 20            # not a tile multiple on purpose -> exercises padding path
    HIDDEN = 256      # module default

    params = init_twinq_params(k_params, state_dim=STATE_DIM, hidden=HIDDEN)
    kparams = prepare_kernel_params(params)

    s = jax.random.normal(k_s, (B, STATE_DIM), jnp.float32)
    a = jax.random.normal(k_a, (B, 1), jnp.float32)

    # Production default tile_b=1024; the B-based cap shrinks it to 16 here so
    # the demo still runs a multi-step grid (exercises the pipeline).
    fwd = jax.jit(functools.partial(twinq_forward, tile_b=1024))
    q1, q2 = fwd(s, a, kparams)
    jax.block_until_ready((q1, q2))

    q1_ref, q2_ref = _reference_forward(s, a, params)
    assert q1.shape == (B, 1) and q2.shape == (B, 1)
    # bf16 matmul inputs / bf16 epilogues with f32 accumulation -> loose
    # tolerance vs the f32 reference.
    assert jnp.allclose(q1, q1_ref, atol=5e-2, rtol=5e-2), \
        float(jnp.max(jnp.abs(q1 - q1_ref)))
    assert jnp.allclose(q2, q2_ref, atol=5e-2, rtol=5e-2), \
        float(jnp.max(jnp.abs(q2 - q2_ref)))

    print("KERNEL_OK")
</pallas_src>

<mosaic_0001>
module attributes {stable_mosaic.version = 11 : i64} {
  func.func @_twinq_kernel(%arg0: i32, %arg1: memref<16x15xbf16, #tpu.memory_space<vmem>>, %arg2: memref<15x512xbf16, #tpu.memory_space<vmem>>, %arg3: memref<256x256xbf16, #tpu.memory_space<vmem>>, %arg4: memref<1x256xbf16, #tpu.memory_space<vmem>>, %arg5: memref<256x256xbf16, #tpu.memory_space<vmem>>, %arg6: memref<1x256xbf16, #tpu.memory_space<vmem>>, %arg7: memref<256x1xbf16, #tpu.memory_space<vmem>>, %arg8: memref<256x1xbf16, #tpu.memory_space<vmem>>, %arg9: memref<1x2xf32, #tpu.memory_space<vmem>>, %arg10: memref<16x2xf32, #tpu.memory_space<vmem>>) attributes {dimension_semantics = [#tpu.dimension_semantics<parallel>], iteration_bounds = array<i64: 2>, scalar_prefetch = 0 : i64, scratch_operands = 0 : i64, tpu.core_type = #tpu.core_type<tc>, window_params = [{transform_indices = @transform_0, window_bounds = array<i64: 16, 15>}, {pipeline_mode = #tpu.pipeline_mode<synchronous>, transform_indices = @transform_1, window_bounds = array<i64: 15, 512>}, {pipeline_mode = #tpu.pipeline_mode<synchronous>, transform_indices = @transform_2, window_bounds = array<i64: 256, 256>}, {pipeline_mode = #tpu.pipeline_mode<synchronous>, transform_indices = @transform_3, window_bounds = array<i64: 1, 256>}, {pipeline_mode = #tpu.pipeline_mode<synchronous>, transform_indices = @transform_4, window_bounds = array<i64: 256, 256>}, {pipeline_mode = #tpu.pipeline_mode<synchronous>, transform_indices = @transform_5, window_bounds = array<i64: 1, 256>}, {pipeline_mode = #tpu.pipeline_mode<synchronous>, transform_indices = @transform_6, window_bounds = array<i64: 256, 1>}, {pipeline_mode = #tpu.pipeline_mode<synchronous>, transform_indices = @transform_7, window_bounds = array<i64: 256, 1>}, {pipeline_mode = #tpu.pipeline_mode<synchronous>, transform_indices = @transform_8, window_bounds = array<i64: 1, 2>}, {transform_indices = @transform_9, window_bounds = array<i64: 16, 2>}]} {
    %c0 = arith.constant 0 : index
    %c0_0 = arith.constant 0 : index
    %0 = vector.load %arg1[%c0, %c0_0] : memref<16x15xbf16, #tpu.memory_space<vmem>>, vector<16x15xbf16>
    %c0_1 = arith.constant 0 : index
    %c0_2 = arith.constant 0 : index
    %1 = vector.load %arg2[%c0_1, %c0_2] : memref<15x512xbf16, #tpu.memory_space<vmem>>, vector<15x512xbf16>
    %cst = arith.constant dense<0.000000e+00> : vector<16x512xf32>
    %2 = tpu.matmul %0, %1, %cst {dimension_numbers = #tpu.dot_dimension_numbers<[1], [0], [0], [1], [0, 0, 1, 1], [], []>} : vector<16x15xbf16>, vector<15x512xbf16>, vector<16x512xf32> -> vector<16x512xf32>
    %3 = arith.truncf %2 : vector<16x512xf32> to vector<16x512xbf16>
    %cst_3 = arith.constant 0.000000e+00 : bf16
    %4 = vector.broadcast %cst_3 : bf16 to vector<16x512xbf16>
    %5 = arith.maximumf %3, %4 : vector<16x512xbf16>
    %6 = vector.extract_strided_slice %5 {offsets = [0, 0], sizes = [16, 256], strides = [1, 1]} : vector<16x512xbf16> to vector<16x256xbf16>
    %7 = vector.extract_strided_slice %5 {offsets = [0, 256], sizes = [16, 256], strides = [1, 1]} : vector<16x512xbf16> to vector<16x256xbf16>
    %c0_4 = arith.constant 0 : index
    %c0_5 = arith.constant 0 : index
    %8 = vector.load %arg3[%c0_4, %c0_5] : memref<256x256xbf16, #tpu.memory_space<vmem>>, vector<256x256xbf16>
    %cst_6 = arith.constant dense<0.000000e+00> : vector<16x256xf32>
    %9 = tpu.matmul %6, %8, %cst_6 {dimension_numbers = #tpu.dot_dimension_numbers<[1], [0], [0], [1], [0, 0, 1, 1], [], []>} : vector<16x256xbf16>, vector<256x256xbf16>, vector<16x256xf32> -> vector<16x256xf32>
    %c0_7 = arith.constant 0 : index
    %c0_8 = arith.constant 0 : index
    %10 = vector.load %arg5[%c0_7, %c0_8] : memref<256x256xbf16, #tpu.memory_space<vmem>>, vector<256x256xbf16>
    %cst_9 = arith.constant dense<0.000000e+00> : vector<16x256xf32>
    %11 = tpu.matmul %7, %10, %cst_9 {dimension_numbers = #tpu.dot_dimension_numbers<[1], [0], [0], [1], [0, 0, 1, 1], [], []>} : vector<16x256xbf16>, vector<256x256xbf16>, vector<16x256xf32> -> vector<16x256xf32>
    %12 = arith.truncf %9 : vector<16x256xf32> to vector<16x256xbf16>
    %c0_10 = arith.constant 0 : index
    %c0_11 = arith.constant 0 : index
    %13 = vector.load %arg4[%c0_10, %c0_11] : memref<1x256xbf16, #tpu.memory_space<vmem>>, vector<1x256xbf16>
    %14 = vector.broadcast %13 : vector<1x256xbf16> to vector<16x256xbf16>
    %15 = arith.addf %12, %14 : vector<16x256xbf16>
    %cst_12 = arith.constant 0.000000e+00 : bf16
    %16 = vector.broadcast %cst_12 : bf16 to vector<16x256xbf16>
    %17 = arith.maximumf %15, %16 : vector<16x256xbf16>
    %18 = arith.truncf %11 : vector<16x256xf32> to vector<16x256xbf16>
    %c0_13 = arith.constant 0 : index
    %c0_14 = arith.constant 0 : index
    %19 = vector.load %arg6[%c0_13, %c0_14] : memref<1x256xbf16, #tpu.memory_space<vmem>>, vector<1x256xbf16>
    %20 = vector.broadcast %19 : vector<1x256xbf16> to vector<16x256xbf16>
    %21 = arith.addf %18, %20 : vector<16x256xbf16>
    %cst_15 = arith.constant 0.000000e+00 : bf16
    %22 = vector.broadcast %cst_15 : bf16 to vector<16x256xbf16>
    %23 = arith.maximumf %21, %22 : vector<16x256xbf16>
    %c0_16 = arith.constant 0 : index
    %c0_17 = arith.constant 0 : index
    %24 = vector.load %arg7[%c0_16, %c0_17] : memref<256x1xbf16, #tpu.memory_space<vmem>>, vector<256x1xbf16>
    %cst_18 = arith.constant dense<0.000000e+00> : vector<16x1xf32>
    %25 = tpu.matmul %17, %24, %cst_18 {dimension_numbers = #tpu.dot_dimension_numbers<[1], [0], [0], [1], [0, 0, 1, 1], [], []>} : vector<16x256xbf16>, vector<256x1xbf16>, vector<16x1xf32> -> vector<16x1xf32>
    %c0_19 = arith.constant 0 : index
    %c0_20 = arith.constant 0 : index
    %26 = vector.load %arg8[%c0_19, %c0_20] : memref<256x1xbf16, #tpu.memory_space<vmem>>, vector<256x1xbf16>
    %cst_21 = arith.constant dense<0.000000e+00> : vector<16x1xf32>
    %27 = tpu.matmul %23, %26, %cst_21 {dimension_numbers = #tpu.dot_dimension_numbers<[1], [0], [0], [1], [0, 0, 1, 1], [], []>} : vector<16x256xbf16>, vector<256x1xbf16>, vector<16x1xf32> -> vector<16x1xf32>
    %28 = tpu.concatenate %25, %27 in 1 : vector<16x1xf32>, vector<16x1xf32> -> vector<16x2xf32>
    %c0_22 = arith.constant 0 : index
    %c0_23 = arith.constant 0 : index
    %29 = vector.load %arg9[%c0_22, %c0_23] : memref<1x2xf32, #tpu.memory_space<vmem>>, vector<1x2xf32>
    %30 = vector.broadcast %29 : vector<1x2xf32> to vector<16x2xf32>
    %31 = arith.addf %28, %30 : vector<16x2xf32>
    %c0_24 = arith.constant 0 : index
    %c0_25 = arith.constant 0 : index
    %32 = vector.load %arg10[%c0_24, %c0_25] : memref<16x2xf32, #tpu.memory_space<vmem>>, vector<16x2xf32>
    tpu.vector_store %arg10[%c0_24, %c0_25], %31 {strides = array<i32>} : memref<16x2xf32, #tpu.memory_space<vmem>>, vector<16x2xf32>,
    return
  }
  func.func @transform_0(%arg0: i32) -> (i32, i32) {
    %c0_i32 = arith.constant 0 : i32
    %c0_i32_0 = arith.constant 0 : i32
    return %arg0, %c0_i32 : i32, i32
  }
  func.func @transform_1(%arg0: i32) -> (i32, i32) {
    %c0_i32 = arith.constant 0 : i32
    %c0_i32_0 = arith.constant 0 : i32
    %c0_i32_1 = arith.constant 0 : i32
    return %c0_i32, %c0_i32_0 : i32, i32
  }
  func.func @transform_2(%arg0: i32) -> (i32, i32) {
    %c0_i32 = arith.constant 0 : i32
    %c0_i32_0 = arith.constant 0 : i32
    %c0_i32_1 = arith.constant 0 : i32
    return %c0_i32, %c0_i32_0 : i32, i32
  }
  func.func @transform_3(%arg0: i32) -> (i32, i32) {
    %c0_i32 = arith.constant 0 : i32
    %c0_i32_0 = arith.constant 0 : i32
    %c0_i32_1 = arith.constant 0 : i32
    return %c0_i32, %c0_i32_0 : i32, i32
  }
  func.func @transform_4(%arg0: i32) -> (i32, i32) {
    %c0_i32 = arith.constant 0 : i32
    %c0_i32_0 = arith.constant 0 : i32
    %c0_i32_1 = arith.constant 0 : i32
    return %c0_i32, %c0_i32_0 : i32, i32
  }
  func.func @transform_5(%arg0: i32) -> (i32, i32) {
    %c0_i32 = arith.constant 0 : i32
    %c0_i32_0 = arith.constant 0 : i32
    %c0_i32_1 = arith.constant 0 : i32
    return %c0_i32, %c0_i32_0 : i32, i32
  }
  func.func @transform_6(%arg0: i32) -> (i32, i32) {
    %c0_i32 = arith.constant 0 : i32
    %c0_i32_0 = arith.constant 0 : i32
    %c0_i32_1 = arith.constant 0 : i32
    return %c0_i32, %c0_i32_0 : i32, i32
  }
  func.func @transform_7(%arg0: i32) -> (i32, i32) {
    %c0_i32 = arith.constant 0 : i32
    %c0_i32_0 = arith.constant 0 : i32
    %c0_i32_1 = arith.constant 0 : i32
    return %c0_i32, %c0_i32_0 : i32, i32
  }
  func.func @transform_8(%arg0: i32) -> (i32, i32) {
    %c0_i32 = arith.constant 0 : i32
    %c0_i32_0 = arith.constant 0 : i32
    %c0_i32_1 = arith.constant 0 : i32
    return %c0_i32, %c0_i32_0 : i32, i32
  }
  func.func @transform_9(%arg0: i32) -> (i32, i32) {
    %c0_i32 = arith.constant 0 : i32
    %c0_i32_0 = arith.constant 0 : i32
    return %arg0, %c0_i32 : i32, i32
  }
}

</mosaic_0001>

<bundles_post_ra>
// kernel: twinq_forward.1
= control target key start
LH: loop header
LB: loop body
LE: loop exit
PB: predicated region body
PF: predicated region fallthrough
CT: control target
= control target key end

     0   :  { %14 = vsyncpa [#allocation3], 0  ;;  %s1900_s30 = smov 0   ;;  %s2186_s0 = inlined_call_operand.vmem [shape: bf16[32,15], index: 0, kind: input, shape index: {}]   ;;  %s2187_s1 = inlined_call_operand.vmem [shape: bf16[15,512], index: 1, kind: input, shape index: {}]   ;;  %s2188_s2 = inlined_call_operand.vmem [shape: bf16[256,256], index: 2, kind: input, shape index: {}]   ;;  %s2189_s3 = inlined_call_operand.vmem [shape: bf16[1,256], index: 3, kind: input, shape index: {}]   ;;  %s2190_s4 = inlined_call_operand.hbm [shape: bf16[256,256], index: 4, kind: input, shape index: {}]   ;;  %s2191_s5 = inlined_call_operand.vmem [shape: bf16[1,256], index: 5, kind: input, shape index: {}]   ;;  %s2192_s6 = inlined_call_operand.vmem [shape: bf16[256,1], index: 6, kind: input, shape index: {}]   ;;  %s2193_s7 = inlined_call_operand.vmem [shape: bf16[256,1], index: 7, kind: input, shape index: {}]   ;;  %s2194_s8 = inlined_call_operand.vmem [shape: f32[1,2], index: 8, kind: input, shape index: {}]   ;;  %s2195_s9 = inlined_call_operand.vmem [shape: f32[32,2], index: 9, kind: output, shape index: {}]  }
   0x1 LB: > { %s1480_s10 = sadd.s32 4294967295, %s1841_s30   ;;  %p1482_p0 = scmp.ge.s32.totalorder %s1841_s30, 1  ;;  %s1841_s30 = sphi %s1900_s30, %s20_s30  }
   0x2   : > { %p245_p1 = scmp.lt.s32.totalorder %s1841_s30, 3  ;;  %s1843_s11 = smov [#allocation2]  }
   0x3   : > { %s266_s12 = sshll.u32 %s1843_s11, 4  ;;  %p1914_p3 = scmp.eq.s32.totalorder %s1480_s10, 0  ;;  %s267_s12 = int_to_ptr.vmem [resolvable:$true] %s266_s12 }
   0x4   : > { %p1908_p2 = pnand %p1482_p0, %p245_p1  ;;  %s1803_s18 = scalar_lea.hbm %s2190_s4, 4096 }
   0x5   : > { %s2200_s14 = scalar_select %p1914_p3, 1, 0 }
   0x6   : > { %s2199_s13 = scalar_select %p1908_p2, 1, 0 }
   0x7   : > { %p1647_p4 = pneg %p1908_p2  ;;  %p1804_p6 = scmp.ne.s32.totalorder %s2190_s4, %s1803_s18 }
   0x8   : > { %p1810_p10 = scmp.lt.u32.totalorder %s1803_s18, %s2190_s4 }
   0x9   : > { %p1922_p5 = pnand %p1914_p3, %p1647_p4 }
   0xb   : > { %p1805_p7 = pneg %p1922_p5 }
   0xd   : > { %p1806_p8 = pnand %p1805_p7, %p1804_p6 }
   0xf   : > { %p1807_p9 = pneg %p1806_p8 }
  0x11   : > { %p1812_p11 = pnand %p1810_p10, %p1807_p9 }
  0x13   : > { %1815 = shalt.err (!%p1812_p11)
}
  0x14   : > { %s1816_s23 = scalar_lea.vmem %s267_s12, 4096  ;;  %p1824_p1 = scmp.lt.s32.totalorder %s267_s12, %s267_s12 }
  0x15   : > { %p1817_p12 = scmp.ne.s32.totalorder %s267_s12, %s1816_s23  ;;  %p1825_p4 = scmp.lt.s32.totalorder %s1816_s23, %s1816_s23 }
  0x17   : > { %p1819_p13 = pnand %p1817_p12, %p1805_p7  ;;  %p1826_p3 = por %p1825_p4, %p1824_p1 }
  0x19   : > { %p1820_p0 = pneg %p1819_p13 }
  0x1b   : > { %p1827_p2 = pnand %p1826_p3, %p1820_p0 }
  0x1d   : > { %1830 = shalt.err (!%p1827_p2)
}
  0x1e   : > { %s1844_s24 = smov 128   ;;  %s1845_s25 = smov 8  }
  0x1f   : > { %1650 = dma.hbm_to_vmem [thread:$0]  (!%p1922_p5), %s2190_s4, 4096, %s267_s12, [#allocation3], %s1844_s24, %s1844_s24, %s1845_s25  }
  0x20   : > { %p2202_p6 = scmp.ne.s32.totalorder %s2199_s13, 0 }
  0x21   : > { %p2203_p8 = scmp.ne.s32.totalorder (!%p2202_p6), %s2200_s14, 0 }
  0x22   : > { %303 = sbr.rel (%p2202_p6) target bundleno = 832 (0x340), region = 56 }
  0x29   : > { %1836 = dma.done.wait (%p2203_p8), [#allocation3], 4096  }
  0x2a   : > { %1838 = vsyncadd (%p2203_p8), [#allocation3], 4294963200  ;;  %vm383_vm0 = vcmask 1046528   ;;  %v1846_v0 = vmov 0   ;;  %s1487_s28 = sshll.u32 %s1480_s10, 1  ;;  %vm384_vm1 = vcmask 1047552  }
  0x2b   : > { %474 = vmatprep.mubr.bf16.mxu1 %v1846_v0  ;;  %431 = vmatprep.mubr.bf16.mxu0 %v1846_v0  ;;  %p340_p2 = scmp.lt.s32.totalorder %s1487_s28, 3  ;;  %v1847_v1 = vmov 65535   ;;  %v1668_v4 = vld [vmem:[%s2187_s1 + $0xc] ss:$16 sps:$4 sm:$0xff]   ;;  %v1670_v5 = vld [vmem:[%s2187_s1 + $0x8] ss:$16 sps:$4 sm:$0xff]  }
  0x2c   : > { %v385_v2 = vsel %vm383_vm0, 4294967295, %v1847_v1  ;;  %v1672_v8 = vld [vmem:[%s2187_s1 + $0x4] ss:$16 sps:$4 sm:$0xff]   ;;  %v1674_v9 = vld [vmem:[%s2187_s1] ss:$16 sps:$4 sm:$0xff]   ;;  %vm379_vm2 = vcmask 121856  }
  0x2d   : > { %s2205_s28 = smov (!%p340_p2, %s1487_s28), 3  ;;  %v386_v3 = vsel %vm384_vm1, %v385_v2, 0  ;;  %v1677_v11 = vld [vmem:[#allocation2 + $0x4] ss:$8 sps:$4 sm:$0xff]   ;;  %v1675_v14 = vld [vmem:[#allocation2] ss:$8 sps:$4 sm:$0xff]  }
  0x2e   : > { %s1488_s29 = sshll.u32 %s2205_s28, 2  ;;  %v397_v6 = vand.u32 %v1668_v4, %v386_v3  ;;  %v394_v7 = vand.u32 %v1670_v5, %v386_v3  ;;  %v391_v12 = vand.u32 %v1672_v8, %v386_v3  ;;  %v388_v13 = vand.u32 %v1674_v9, %v386_v3  ;;  %v1680_v15 = vld [vmem:[#allocation2 + $0x14] ss:$8 sps:$4 sm:$0xff]   ;;  %v1678_v16 = vld [vmem:[#allocation2 + $0x10] ss:$8 sps:$4 sm:$0xff]   ;;  %v1771_v52 = vld [vmem:[%s2193_s7 + $0x40] sm:$0xff]  }
  0x2f   : > { %s343_s15 = scalar_lea.vmem %s2186_s0, %s1488_s29  ;;  %v1683_v17 = vld [vmem:[#allocation2 + $0x24] ss:$8 sps:$4 sm:$0xff]   ;;  %v1681_v18 = vld [vmem:[#allocation2 + $0x20] ss:$8 sps:$4 sm:$0xff]   ;;  %v1686_v19 = vld [vmem:[#allocation2 + $0x34] ss:$8 sps:$4 sm:$0xff]  }
  0x30   : > { %442 = vmatprep.subr.bf16.mxu1 %v397_v6  ;;  %v1671_v10 = vld [vmem:[%s343_s15] sm:$0xff]   ;;  %399 = vmatprep.subr.bf16.mxu0 %v391_v12  ;;  %v1684_v20 = vld [vmem:[#allocation2 + $0x30] ss:$8 sps:$4 sm:$0xff]   ;;  %v1692_v23 = vld [vmem:[#allocation2 + $0x54] ss:$8 sps:$4 sm:$0xff]   ;;  %s1849_s20 = smov 1  }
  0x31   : > { %443 = vmatpush1.bf16.msra.mxu1 %v394_v7  ;;  %400 = vmatpush1.bf16.msra.mxu0 %v388_v13  ;;  %v1689_v21 = vld [vmem:[#allocation2 + $0x44] ss:$8 sps:$4 sm:$0xff]   ;;  %v1687_v22 = vld [vmem:[#allocation2 + $0x40] ss:$8 sps:$4 sm:$0xff]   ;;  %v1690_v24 = vld [vmem:[#allocation2 + $0x50] ss:$8 sps:$4 sm:$0xff]  }
  0x32   : > { %920 = vmatprep.subr.bf16.mxu1 %v1677_v11  ;;  %v1695_v25 = vld [vmem:[#allocation2 + $0x64] ss:$8 sps:$4 sm:$0xff]   ;;  %v1693_v26 = vld [vmem:[#allocation2 + $0x60] ss:$8 sps:$4 sm:$0xff]   ;;  %v1698_v27 = vld [vmem:[#allocation2 + $0x74] ss:$8 sps:$4 sm:$0xff]  }
  0x33   : > { %v1696_v28 = vld [vmem:[#allocation2 + $0x70] ss:$8 sps:$4 sm:$0xff]   ;;  %v1701_v29 = vld [vmem:[#allocation2 + $0x84] ss:$8 sps:$4 sm:$0xff]   ;;  %v1699_v30 = vld [vmem:[#allocation2 + $0x80] ss:$8 sps:$4 sm:$0xff]  }
  0x34   : > { %1497 = vmatmul.mubr.msk.bf16.vlgmr.msra.gmra.mrb[0].mxu1 %vm379_vm2, %v1671_v10  ;;  %1496 = vmatmul.mubr.msk.bf16.vlgmr.msra.gmra.mrb[0].mxu0 %vm379_vm2, %v1671_v10  ;;  %v1704_v31 = vld [vmem:[#allocation2 + $0x94] ss:$8 sps:$4 sm:$0xff]   ;;  %v1702_v32 = vld [vmem:[#allocation2 + $0x90] ss:$8 sps:$4 sm:$0xff]   ;;  %v1707_v33 = vld [vmem:[#allocation2 + $0xa4] ss:$8 sps:$4 sm:$0xff]  }
  0x35   : > { %921 = vmatpush1.bf16.msra.mxu1 %v1675_v14  ;;  %v1705_v34 = vld [vmem:[#allocation2 + $0xa0] ss:$8 sps:$4 sm:$0xff]   ;;  %v1710_v35 = vld [vmem:[#allocation2 + $0xb4] ss:$8 sps:$4 sm:$0xff]   ;;  %v1708_v36 = vld [vmem:[#allocation2 + $0xb0] ss:$8 sps:$4 sm:$0xff]  }
  0x36   : > { %922 = vmatprep.subr.bf16.mxu1 %v1680_v15  ;;  %v1713_v37 = vld [vmem:[#allocation2 + $0xc4] ss:$8 sps:$4 sm:$0xff]   ;;  %v1711_v38 = vld [vmem:[#allocation2 + $0xc0] ss:$8 sps:$4 sm:$0xff]   ;;  %v1716_v39 = vld [vmem:[#allocation2 + $0xd4] ss:$8 sps:$4 sm:$0xff]  }
  0x37   : > { %v1714_v40 = vld [vmem:[#allocation2 + $0xd0] ss:$8 sps:$4 sm:$0xff]   ;;  %v1719_v41 = vld [vmem:[#allocation2 + $0xe4] ss:$8 sps:$4 sm:$0xff]   ;;  %v1717_v42 = vld [vmem:[#allocation2 + $0xe0] ss:$8 sps:$4 sm:$0xff]  }
  0x38   : > { %v1722_v43 = vld [vmem:[#allocation2 + $0xf4] ss:$8 sps:$4 sm:$0xff]   ;;  %v1720_v44 = vld [vmem:[#allocation2 + $0xf0] ss:$8 sps:$4 sm:$0xff]   ;;  %v1723_v45 = vld [vmem:[%s2188_s2] ss:$8 sps:$4 sm:$0xff]  }
  0x39   : > { %923 = vmatpush1.bf16.msra.mxu1 %v1678_v16  ;;  %v1725_v46 = vld [vmem:[%s2188_s2 + $0x4] ss:$8 sps:$4 sm:$0xff]   ;;  %v1728_v47 = vld [vmem:[%s2188_s2 + $0x14] ss:$8 sps:$4 sm:$0xff]   ;;  %v1726_v48 = vld [vmem:[%s2188_s2 + $0x10] ss:$8 sps:$4 sm:$0xff]  }
  0x3a   : > { %924 = vmatprep.subr.bf16.mxu1 %v1683_v17  ;;  %685 = vmatprep.subr.bf16.mxu0 %v1725_v46  ;;  %v1731_v49 = vld [vmem:[%s2188_s2 + $0x24] ss:$8 sps:$4 sm:$0xff]   ;;  %v1729_v50 = vld [vmem:[%s2188_s2 + $0x20] ss:$8 sps:$4 sm:$0xff]   ;;  %v1734_v51 = vld [vmem:[%s2188_s2 + $0x34] ss:$8 sps:$4 sm:$0xff]  }
  0x3b   : > { %686 = vmatpush1.bf16.msra.mxu0 %v1723_v45  ;;  %v1732_v53 = vld [vmem:[%s2188_s2 + $0x30] ss:$8 sps:$4 sm:$0xff]   ;;  %v1737_v54 = vld [vmem:[%s2188_s2 + $0x44] ss:$8 sps:$4 sm:$0xff]   ;;  %v1735_v55 = vld [vmem:[%s2188_s2 + $0x40] ss:$8 sps:$4 sm:$0xff]  }
  0x3c   : > { %687 = vmatprep.subr.bf16.mxu0 %v1728_v47  ;;  %v1740_v56 = vld [vmem:[%s2188_s2 + $0x54] ss:$8 sps:$4 sm:$0xff]   ;;  %v1738_v57 = vld [vmem:[%s2188_s2 + $0x50] ss:$8 sps:$4 sm:$0xff]   ;;  %v1743_v58 = vld [vmem:[%s2188_s2 + $0x64] ss:$8 sps:$4 sm:$0xff]  }
  0x3d   : > { %925 = vmatpush1.bf16.msra.mxu1 %v1681_v18  ;;  %v1741_v59 = vld [vmem:[%s2188_s2 + $0x60] ss:$8 sps:$4 sm:$0xff]   ;;  %v1746_v60 = vld [vmem:[%s2188_s2 + $0x74] ss:$8 sps:$4 sm:$0xff]   ;;  %v1744_v61 = vld [vmem:[%s2188_s2 + $0x70] ss:$8 sps:$4 sm:$0xff]  }
  0x3e   : > { %926 = vmatprep.subr.bf16.mxu1 %v1686_v19  ;;  %v1749_v62 = vld [vmem:[%s2188_s2 + $0x84] ss:$8 sps:$4 sm:$0xff]   ;;  %v1747_v63 = vld [vmem:[%s2188_s2 + $0x80] ss:$8 sps:$4 sm:$0xff]   ;;  %v1752_v1 = vld [vmem:[%s2188_s2 + $0x94] ss:$8 sps:$4 sm:$0xff]  }
  0x3f   : > { %688 = vmatpush1.bf16.msra.mxu0 %v1726_v48  ;;  %v1750_v2 = vld [vmem:[%s2188_s2 + $0x90] ss:$8 sps:$4 sm:$0xff]   ;;  %v1755_v3 = vld [vmem:[%s2188_s2 + $0xa4] ss:$8 sps:$4 sm:$0xff]   ;;  %v1753_v4 = vld [vmem:[%s2188_s2 + $0xa0] ss:$8 sps:$4 sm:$0xff]  }
  0x40   : > { %689 = vmatprep.subr.bf16.mxu0 %v1731_v49  ;;  %v1758_v5 = vld [vmem:[%s2188_s2 + $0xb4] ss:$8 sps:$4 sm:$0xff]   ;;  %v1756_v6 = vld [vmem:[%s2188_s2 + $0xb0] ss:$8 sps:$4 sm:$0xff]   ;;  %v1761_v7 = vld [vmem:[%s2188_s2 + $0xc4] ss:$8 sps:$4 sm:$0xff]  }
  0x41   : > { %927 = vmatpush1.bf16.msra.mxu1 %v1684_v20  ;;  %v1759_v8 = vld [vmem:[%s2188_s2 + $0xc0] ss:$8 sps:$4 sm:$0xff]   ;;  %v1764_v9 = vld [vmem:[%s2188_s2 + $0xd4] ss:$8 sps:$4 sm:$0xff]   ;;  %v1762_v10 = vld [vmem:[%s2188_s2 + $0xd0] ss:$8 sps:$4 sm:$0xff]  }
  0x42   : > { %928 = vmatprep.subr.bf16.mxu1 %v1689_v21  ;;  %v1767_v11 = vld [vmem:[%s2188_s2 + $0xe4] ss:$8 sps:$4 sm:$0xff]   ;;  %v1765_v12 = vld [vmem:[%s2188_s2 + $0xe0] ss:$8 sps:$4 sm:$0xff]   ;;  %v1770_v13 = vld [vmem:[%s2188_s2 + $0xf4] ss:$8 sps:$4 sm:$0xff]  }
  0x43   : > { %690 = vmatpush1.bf16.msra.mxu0 %v1729_v50  ;;  %v1768_v14 = vld [vmem:[%s2188_s2 + $0xf0] ss:$8 sps:$4 sm:$0xff]   ;;  %v1787_v46 = vld [vmem:[%s2192_s6 + $0x40] sm:$0xff]   ;;  %v1789_v48 = vld [vmem:[%s2192_s6 + $0x48] sm:$0xff]   ;;  %s1490_s21 = sshll.u32 %s2205_s28, 3  ;;  %vm1397_vm3 = vcmask 7168  }
  0x44   : > { %691 = vmatprep.subr.bf16.mxu0 %v1734_v51  ;;  %v1786_v45 = vld [vmem:[%s2193_s7 + $0x38] sm:$0xff]   ;;  %v1788_v47 = vld [vmem:[%s2192_s6] sm:$0xff]   ;;  %v1790_v49 = vld [vmem:[%s2192_s6 + $0x8] sm:$0xff]   ;;  %s349_s26 = scalar_lea.vmem %s2195_s9, %s1490_s21  ;;  %vm1409_vm4 = vcmask 15360  }
  0x45   : > { %929 = vmatpush1.bf16.msra.mxu1 %v1687_v22  ;;  %v1791_v50 = vld [vmem:[%s2192_s6 + $0x50] sm:$0xff]  }
  0x46   : > { %930 = vmatprep.subr.bf16.mxu1 %v1692_v23  ;;  %v1792_v51 = vld [vmem:[%s2192_s6 + $0x10] sm:$0xff]  }
  0x47   : > { %692 = vmatpush1.bf16.msra.mxu0 %v1732_v53  ;;  %v1794_v53 = vld [vmem:[%s2192_s6 + $0x18] sm:$0xff]  }
  0x48   : > { %693 = vmatprep.subr.bf16.mxu0 %v1737_v54  ;;  %v1795_v54 = vld [vmem:[%s2192_s6 + $0x60] sm:$0xff]  }
  0x49   : > { %931 = vmatpush1.bf16.msra.mxu1 %v1690_v24 }
  0x4a   : > { %932 = vmatprep.subr.bf16.mxu1 %v1695_v25 }
  0x4b   : > { %694 = vmatpush1.bf16.msra.mxu0 %v1735_v55  ;;  %v1796_v55 = vld [vmem:[%s2192_s6 + $0x20] sm:$0xff]  }
  0x4c   : > { %695 = vmatprep.subr.bf16.mxu0 %v1740_v56  ;;  %v1797_v56 = vld [vmem:[%s2192_s6 + $0x68] sm:$0xff]  }
  0x4d   : > { %933 = vmatpush1.bf16.msra.mxu1 %v1693_v26 }
  0x4e   : > { %934 = vmatprep.subr.bf16.mxu1 %v1698_v27  ;;  %v1772_v27 = vld [vmem:[%s2193_s7] sm:$0xff]  }
  0x4f   : > { %696 = vmatpush1.bf16.msra.mxu0 %v1738_v57  ;;  %v1798_v57 = vld [vmem:[%s2192_s6 + $0x28] sm:$0xff]  }
  0x50   : > { %697 = vmatprep.subr.bf16.mxu0 %v1743_v58  ;;  %v1799_v58 = vld [vmem:[%s2192_s6 + $0x70] sm:$0xff]  }
  0x51   : > { %935 = vmatpush1.bf16.msra.mxu1 %v1696_v28 }
  0x52   : > { %936 = vmatprep.subr.bf16.mxu1 %v1701_v29 }
  0x53   : > { %698 = vmatpush1.bf16.msra.mxu0 %v1741_v59  ;;  %v1800_v59 = vld [vmem:[%s2192_s6 + $0x30] sm:$0xff]  }
  0x54   : > { %699 = vmatprep.subr.bf16.mxu0 %v1746_v60  ;;  %v1801_v60 = vld [vmem:[%s2192_s6 + $0x78] sm:$0xff]  }
  0x55   : > { %937 = vmatpush1.bf16.msra.mxu1 %v1699_v30  ;;  %v1773_v30 = vld [vmem:[%s2193_s7 + $0x48] sm:$0xff]  }
  0x56   : > { %938 = vmatprep.subr.bf16.mxu1 %v1704_v31 }
  0x57   : > { %700 = vmatpush1.bf16.msra.mxu0 %v1744_v61  ;;  %v1802_v61 = vld [vmem:[%s2192_s6 + $0x38] sm:$0xff]  }
  0x58   : > { %701 = vmatprep.subr.bf16.mxu0 %v1749_v62  ;;  %v1848_v62 = vmov 1966171168  }
  0x59   : > { %939 = vmatpush1.bf16.msra.mxu1 %v1702_v32 }
  0x5a   : > { %940 = vmatprep.subr.bf16.mxu1 %v1707_v33  ;;  %v1774_v33 = vld [vmem:[%s2193_s7 + $0x8] sm:$0xff]  }
  0x5b   : > { %702 = vmatpush1.bf16.msra.mxu0 %v1747_v63  ;;  %v976_v63 = vunpack.c.l.s4 %v1848_v62 }
  0x5c   : > { %703 = vmatprep.subr.bf16.mxu0 %v1752_v1  ;;  %v978_v1 = vlaneseq }
  0x5d   : > { %941 = vmatpush1.bf16.msra.mxu1 %v1705_v34  ;;  %v1775_v34 = vld [vmem:[%s2193_s7 + $0x50] sm:$0xff]  }
  0x5e   : > { %942 = vmatprep.subr.bf16.mxu1 %v1710_v35  ;;  %v1776_v35 = vld [vmem:[%s2193_s7 + $0x10] sm:$0xff]  }
  0x5f   : > { %704 = vmatpush1.bf16.msra.mxu0 %v1750_v2  ;;  %v977_v2 = vunpack.c.0.s8 %v976_v63 }
  0x60   : > { %705 = vmatprep.subr.bf16.mxu0 %v1755_v3  ;;  %v979_v3 = vshrl.u32 %v978_v1, 7 }
  0x61   : > { %943 = vmatpush1.bf16.msra.mxu1 %v1708_v36  ;;  %v1777_v36 = vld [vmem:[%s2193_s7 + $0x58] sm:$0xff]  }
  0x62   : > { %944 = vmatprep.subr.bf16.mxu1 %v1713_v37  ;;  %v1778_v37 = vld [vmem:[%s2193_s7 + $0x18] sm:$0xff]  }
  0x63   : > { %706 = vmatpush1.bf16.msra.mxu0 %v1753_v4  ;;  %v1563_v4 = vld.sshfl [vmem:[%s2191_s5] sm:$0x11 pattern:$0x75316420] }
  0x64   : > { %707 = vmatprep.subr.bf16.mxu0 %v1758_v5  ;;  %v980_v5 = vsub.s32 %v977_v2, %v979_v3 }
  0x65   : > { %945 = vmatpush1.bf16.msra.mxu1 %v1711_v38  ;;  %v1779_v38 = vld [vmem:[%s2193_s7 + $0x60] sm:$0xff]  }
  0x66   : > { %946 = vmatprep.subr.bf16.mxu1 %v1716_v39  ;;  %v1780_v39 = vld [vmem:[%s2193_s7 + $0x20] sm:$0xff]  }
  0x67   : > { %708 = vmatpush1.bf16.msra.mxu0 %v1756_v6  ;;  %v1018_v6 = vcombine.high %v1563_v4, %v1563_v4 }
  0x68   : > { %709 = vmatprep.subr.bf16.mxu0 %v1761_v7  ;;  %v1562_v7 = vld.sshfl [vmem:[%s2189_s3] sm:$0x11 pattern:$0x75316420] }
  0x69   : > { %947 = vmatpush1.bf16.msra.mxu1 %v1714_v40  ;;  %v1781_v40 = vld [vmem:[%s2193_s7 + $0x68] sm:$0xff]  }
  0x6a   : > { %948 = vmatprep.subr.bf16.mxu1 %v1719_v41  ;;  %v1782_v41 = vld [vmem:[%s2193_s7 + $0x28] sm:$0xff]  }
  0x6b   : > { %710 = vmatpush1.bf16.msra.mxu0 %v1759_v8  ;;  %v1025_v8 = vrot.slane %v1563_v4, %v980_v5 }
  0x6c   : > { %711 = vmatprep.subr.bf16.mxu0 %v1764_v9  ;;  %v974_v9 = vcombine.high %v1562_v7, %v1562_v7 }
  0x6d   : > { %949 = vmatpush1.bf16.msra.mxu1 %v1717_v42  ;;  %v1783_v42 = vld [vmem:[%s2193_s7 + $0x70] sm:$0xff]  }
  0x6e   : > { %950 = vmatprep.subr.bf16.mxu1 %v1722_v43  ;;  %v1784_v43 = vld [vmem:[%s2193_s7 + $0x30] sm:$0xff]  }
  0x6f   : > { %712 = vmatpush1.bf16.msra.mxu0 %v1762_v10  ;;  %v1032_v10 = vrot.slane %v1018_v6, %v980_v5 }
  0x70   : > { %713 = vmatprep.subr.bf16.mxu0 %v1767_v11  ;;  %v981_v11 = vrot.slane %v1562_v7, %v980_v5 }
  0x71   : > { %951 = vmatpush1.bf16.msra.mxu1 %v1720_v44  ;;  %v1785_v44 = vld [vmem:[%s2193_s7 + $0x78] sm:$0xff]  }
  0x72   : > { %1621 = vmatprep.subr.bf16.mxu1 %v1771_v52  ;;  %v1793_v52 = vld [vmem:[%s2192_s6 + $0x58] sm:$0xff]  }
  0x73   : > { %714 = vmatpush1.bf16.msra.mxu0 %v1765_v12  ;;  %v994_v12 = vsub.s32 0, %v979_v3 }
  0x74   : > { %715 = vmatprep.subr.bf16.mxu0 %v1770_v13  ;;  %v1034_v13 = vpack.i.b16 %v1025_v8, %v1025_v8 }
  0x77   : > { %716 = vmatpush1.bf16.msra.mxu0 %v1768_v14  ;;  %v988_v14 = vrot.slane %v974_v9, %v980_v5 }
  0x78   : > { %1599 = vmatprep.subr.bf16.mxu0 %v1787_v46 }
 0x107   : > { %v476_v15 = vpop.f32.mrb[0].mxu1  ;;  %v433_v20 = vpop.f32.mrb[0].mxu0 }
 0x108   : > { %v478_v16 = vpop.f32.mrb[1].mxu1  ;;  %v435_v22 = vpop.f32.mrb[1].mxu0 }
 0x109   : > { %v480_v17 = vpop.f32.mrb[2].mxu1  ;;  %v437_v23 = vpop.f32.mrb[2].mxu0 }
 0x10a   : > { %v487_v18 = vpack.c.bf16 %v480_v17, %v476_v15  ;;  %v482_v19 = vpop.f32.mrb[3].mxu1  ;;  %v485_v25 = vpack.c.bf16 %v437_v23, %v433_v20  ;;  %v439_v26 = vpop.f32.mrb[3].mxu0  ;;  %v1041_v15 = vpack.i.b16 %v1032_v10, %v1032_v10  ;;  %v990_v17 = vpack.i.b16 %v981_v11, %v981_v11 }
 0x10b   : > { %v488_v21 = vpack.c.bf16 %v482_v19, %v478_v16  ;;  %v486_v29 = vpack.c.bf16 %v439_v26, %v435_v22  ;;  %v1039_v19 = vrot.slane %v1034_v13, %v994_v12  ;;  %v997_v20 = vpack.i.b16 %v988_v14, %v988_v14 }
 0x10c   : > { %v491_v28 = vmax.bf16 %v1846_v0, %v487_v18  ;;  %v489_v31 = vmax.bf16 %v1846_v0, %v485_v25  ;;  %v1046_v22 = vrot.slane %v1041_v15, %v994_v12 }
 0x10d   : > { %v492_v24 = vmax.bf16 %v1846_v0, %v488_v21  ;;  %v490_v32 = vmax.bf16 %v1846_v0, %v486_v29 }
 0x10f   : > { %952 = vmatprep.mubr.bf16.mxu1 %v492_v24  ;;  %717 = vmatprep.mubr.bf16.mxu0 %v490_v32 }
 0x110   : > { %953 = vmatmul.mubr.bf16.vlgmr.msra.gmra.mrb[4].mxu1 %v491_v28  ;;  %718 = vmatmul.mubr.bf16.vlgmr.msra.gmra.mrb[4].mxu0 %v489_v31  ;;  %v995_v28 = vrot.slane %v990_v17, %v994_v12  ;;  %v1002_v31 = vrot.slane %v997_v20, %v994_v12 }
 0x111   : > { %1622 = vmatpush3.bf16.msra.mxu1 %v1772_v27  ;;  %1600 = vmatpush3.bf16.msra.mxu0 %v1788_v47 }
 0x112   : > { %1623 = vmatprep.subr.bf16.mxu1 %v1773_v30  ;;  %1601 = vmatprep.subr.bf16.mxu0 %v1789_v48 }
 0x115   : > { %1624 = vmatpush3.bf16.msra.mxu1 %v1774_v33  ;;  %1602 = vmatpush3.bf16.msra.mxu0 %v1790_v49 }
 0x116   : > { %1625 = vmatprep.subr.bf16.mxu1 %v1775_v34  ;;  %1603 = vmatprep.subr.bf16.mxu0 %v1791_v50 }
 0x119   : > { %1626 = vmatpush3.bf16.msra.mxu1 %v1776_v35  ;;  %1604 = vmatpush3.bf16.msra.mxu0 %v1792_v51 }
 0x11a   : > { %1627 = vmatprep.subr.bf16.mxu1 %v1777_v36  ;;  %1605 = vmatprep.subr.bf16.mxu0 %v1793_v52 }
 0x11d   : > { %1628 = vmatpush3.bf16.msra.mxu1 %v1778_v37  ;;  %1606 = vmatpush3.bf16.msra.mxu0 %v1794_v53 }
 0x11e   : > { %1629 = vmatprep.subr.bf16.mxu1 %v1779_v38  ;;  %1607 = vmatprep.subr.bf16.mxu0 %v1795_v54 }
 0x121   : > { %1630 = vmatpush3.bf16.msra.mxu1 %v1780_v39  ;;  %1608 = vmatpush3.bf16.msra.mxu0 %v1796_v55 }
 0x122   : > { %1631 = vmatprep.subr.bf16.mxu1 %v1781_v40  ;;  %1609 = vmatprep.subr.bf16.mxu0 %v1797_v56 }
 0x125   : > { %1632 = vmatpush3.bf16.msra.mxu1 %v1782_v41  ;;  %1610 = vmatpush3.bf16.msra.mxu0 %v1798_v57 }
 0x126   : > { %1633 = vmatprep.subr.bf16.mxu1 %v1783_v42  ;;  %1611 = vmatprep.subr.bf16.mxu0 %v1799_v58 }
 0x129   : > { %1634 = vmatpush3.bf16.msra.mxu1 %v1784_v43  ;;  %1612 = vmatpush3.bf16.msra.mxu0 %v1800_v59 }
 0x12a   : > { %1635 = vmatprep.subr.bf16.mxu1 %v1785_v44  ;;  %1613 = vmatprep.subr.bf16.mxu0 %v1801_v60 }
 0x12d   : > { %1636 = vmatpush3.bf16.msra.mxu1 %v1786_v45  ;;  %1614 = vmatpush3.bf16.msra.mxu0 %v1802_v61 }
 0x1e3   : > { %v954_v16 = vpop.f32.mrb[4].mxu1  ;;  %v719_v25 = vpop.f32.mrb[4].mxu0 }
 0x1e4   : > { %v956_v18 = vpop.f32.mrb[5].mxu1  ;;  %v721_v27 = vpop.f32.mrb[5].mxu0 }
 0x1e5   : > { %v958_v21 = vpop.f32.mrb[6].mxu1  ;;  %v723_v30 = vpop.f32.mrb[6].mxu0 }
 0x1e6   : > { %v1007_v23 = vpack.c.bf16 %v958_v21, %v954_v16  ;;  %v960_v24 = vpop.f32.mrb[7].mxu1  ;;  %v963_v33 = vpack.c.bf16 %v723_v30, %v719_v25  ;;  %v725_v34 = vpop.f32.mrb[7].mxu0 }
 0x1e7   : > { %v1008_v26 = vpack.c.bf16 %v960_v24, %v956_v18  ;;  %v964_v35 = vpack.c.bf16 %v725_v34, %v721_v27 }
 0x1e8   : > { %v1047_v29 = vadd.bf16 %v1039_v19, %v1007_v23  ;;  %v1003_v37 = vadd.bf16 %v995_v28, %v963_v33 }
 0x1e9   : > { %v1048_v32 = vadd.bf16 %v1046_v22, %v1008_v26  ;;  %v1004_v39 = vadd.bf16 %v1002_v31, %v964_v35 }
 0x1ea   : > { %v1049_v38 = vmax.bf16 %v1846_v0, %v1047_v29  ;;  %v1005_v40 = vmax.bf16 %v1846_v0, %v1003_v37 }
 0x1eb   : > { %v1050_v36 = vmax.bf16 %v1846_v0, %v1048_v32  ;;  %v1006_v41 = vmax.bf16 %v1846_v0, %v1004_v39  ;;  %v1596_v0 = vld [vmem:[%s2194_s8] ss:$0 sm:$0xff] }
 0x1ed   : > { %1380 = vmatprep.mubr.bf16.mxu1 %v1050_v36  ;;  %1211 = vmatprep.mubr.bf16.mxu0 %v1006_v41 }
 0x1ee   : > { %1381 = vmatmul.mubr.bf16.vlgmr.msra.gmra.mrb[8].mxu1 %v1049_v38  ;;  %1212 = vmatmul.mubr.bf16.vlgmr.msra.gmra.mrb[8].mxu0 %v1005_v40 }
 0x2c1   : > { %v1637_v42 = vpop.f32.mrb[8].mxu1  ;;  %v1615_v47 = vpop.f32.mrb[8].mxu0 }
 0x2c2   : > { %v1638_v43 = vpop.f32.mrb[9].mxu1  ;;  %v1616_v49 = vpop.f32.mrb[9].mxu0 }
 0x2c3   : > { %v1639_v44 = vadd.f32 %v1638_v43, %v1637_v42  ;;  %v1640_v45 = vpop.f32.mrb[10].mxu1  ;;  %v1617_v50 = vadd.f32 %v1616_v49, %v1615_v47  ;;  %v1618_v51 = vpop.f32.mrb[10].mxu0 }
 0x2c4   : > { %v1641_v46 = vpop.f32.mrb[11].mxu1  ;;  %v1619_v52 = vpop.f32.mrb[11].mxu0 }
 0x2c5   : > { %v1642_v48 = vadd.f32 %v1641_v46, %v1640_v45  ;;  %1391 = vrot.lane.b32.xlu0 %v1639_v44, %s1849_s20  ;;  %v1620_v53 = vadd.f32 %v1619_v52, %v1618_v51 }
 0x2c9   : > { %1393 = vrot.lane.b32.xlu0 %v1642_v48, %s1849_s20 }
 0x337   : > { %v1392_v54 = vpop.permute.xlu0 %1391 }
 0x338   : > { %v1398_v55 = vsel %vm1397_vm3, %v1617_v50, %v1392_v54 }
 0x339   : > { %v1407_v56 = vadd.f32 %v1596_v0, %v1398_v55 }
 0x33b   : > { %1410 = vst.msk [vmem:[%s349_s26] sm:$0xff] %vm1409_vm4, %v1407_v56  ;;  %v1394_v57 = vpop.permute.xlu0 %1393 }
 0x33c   : > { %v1399_v58 = vsel %vm1397_vm3, %v1620_v53, %v1394_v57 }
 0x33d   : > { %v1408_v59 = vadd.f32 %v1596_v0, %v1399_v58 }
 0x33f   : > { %1411 = vst.msk [vmem:[%s349_s26 + $0x8] sm:$0xff] %vm1409_vm4, %v1408_v59 }
 0x340 PF: > { %s20_s30 = sadd.s32 1, %s1841_s30  }
 0x341   : > { %p17_p3 = scmp.ge.s32.totalorder %s20_s30, 4  }
 0x343   :  { %19 = sbr.rel (!%p17_p3) target bundleno = 1 (0x1), region = 91 }
 0x34a   :  { %1434 = vsyncpa [#allocation3], 1 }
 0x34b   :  { %1436 = vsyncpa [#allocation3 + $0x1], 1 }

</bundles_post_ra>
